<compile_context>
chip_gen: v5e
topology: v5e:2x2
jax: 0.10.0
libtpu: 0.0.40
codegen_flags: <defaults>
</compile_context>

<pallas_src>
import numpy as np

import jax
import jax.numpy as jnp
from jax.experimental import pallas as pl
from jax.experimental.pallas import tpu as pltpu  # noqa: F401  (TPU backend assumed)


# ----------------------------------------------------------------------------
# Problem configuration (small, deterministic)
# ----------------------------------------------------------------------------
B, C_IN, H, W = 2, 3, 16, 16          # input image, NCHW like PyTorch
H4, W4 = H // 4, W // 4               # output spatial resolution (x.size(2)//4)
S = H4 * W4                           # output spatial positions per image (lane axis)
HW = H * W                            # input spatial positions per image

C_FEAT = 32                           # backbone_feature_num
C_CELL = 16                           # cell_channel[0] (!= C_FEAT -> reduce convs used)
OUT_DIM = 17                          # out_dim (COCO keypoints)

# parts_mode(...) stand-in: COCO-like grouping of keypoints into body parts.
PARTS = {
    "head":        [0, 1, 2, 3, 4],
    "shoulder":    [5, 6],
    "elbow_wrist": [7, 8, 9, 10],
    "hip":         [11, 12],
    "knee_ankle":  [13, 14, 15, 16],
}
P = len(PARTS)
C_RED = P * C_CELL                    # concatenated reduce-conv output channels (80)


# ----------------------------------------------------------------------------
# Fused Pallas kernel: pool + backbone proj + all parts + scatter + part-sum
# Layout inside the kernel: channels on sublanes, spatial on lanes (NCHW-like),
# so the output needs no transpose afterwards.
# ----------------------------------------------------------------------------
def fused_kernel(x_ref, pool_ref, wbt_ref, bb_ref, wrt_ref, br_ref,
                 whst_ref, bhs_ref, o_ref):
    pool = pool_ref[...]                 # (HW, S)   4x4 avg-pool as a matmul
    wbt, bb = wbt_ref[...], bb_ref[...]  # (C_FEAT, C_IN), (C_FEAT, 1)
    wrt, br = wrt_ref[...], br_ref[...]  # (C_RED,  C_FEAT), (C_RED, 1)
    whst, bhs = whst_ref[...], bhs_ref[...]  # (OUT_DIM, C_RED), (OUT_DIM, 1)

    # B=2: static unroll inside the single block (no grid-step overhead).
    for b in range(B):
        xb = x_ref[b]                                                   # (C_IN, HW)
        # backbone stand-in: 4x4 average pool (matmul) + 1x1 conv + ReLU
        pooled = jnp.dot(xb, pool, preferred_element_type=jnp.float32)  # (C_IN, S)
        feat = jnp.maximum(
            jnp.dot(wbt, pooled, preferred_element_type=jnp.float32) + bb,
            0.0)                                                        # (C_FEAT, S)
        # all parts' reduce 1x1 convs (concatenated along sublanes)
        hred = jnp.dot(wrt, feat, preferred_element_type=jnp.float32) + br  # (C_RED, S)
        # all parts' heads (block-diag) + keypoint scatter + sum over parts,
        # pre-folded on the host into one (OUT_DIM, C_RED) matrix
        o_ref[b] = (jnp.dot(whst, jnp.maximum(hred, 0.0),
                            preferred_element_type=jnp.float32) + bhs)      # (OUT_DIM, S)


# ----------------------------------------------------------------------------
# Wrapper: only free bitcast reshapes outside the kernel
# ----------------------------------------------------------------------------
@jax.jit
def body_parts_forward(x_nchw, fused_params):
    """Full forward: NCHW input -> (B, OUT_DIM, H//4, W//4)."""
    pool, wbt, bb, wrt, br, whst, bhs = fused_params

    x_rows = x_nchw.reshape(B, C_IN, HW)          # contiguous merge -> bitcast, no copy

    out = pl.pallas_call(
        fused_kernel,
        out_shape=jax.ShapeDtypeStruct((B, OUT_DIM, S), jnp.float32),
        in_specs=[
            pl.BlockSpec((B, C_IN, HW), lambda: (0, 0, 0)),   # raw input rows
            pl.BlockSpec((HW, S), lambda: (0, 0)),            # pooling matrix
            pl.BlockSpec((C_FEAT, C_IN), lambda: (0, 0)),     # backbone W^T
            pl.BlockSpec((C_FEAT, 1), lambda: (0, 0)),        # backbone bias
            pl.BlockSpec((C_RED, C_FEAT), lambda: (0, 0)),    # reduce convs (cat) W^T
            pl.BlockSpec((C_RED, 1), lambda: (0, 0)),         # reduce biases (cat)
            pl.BlockSpec((OUT_DIM, C_RED), lambda: (0, 0)),   # head@scatter (folded) W^T
            pl.BlockSpec((OUT_DIM, 1), lambda: (0, 0)),       # head bias @ scatter
        ],
        out_specs=pl.BlockSpec((B, OUT_DIM, S), lambda: (0, 0, 0)),
    )(x_rows, pool, wbt, bb, wrt, br, whst, bhs)

    return out.reshape(B, OUT_DIM, H4, W4)        # split last dim -> bitcast, no copy


# ----------------------------------------------------------------------------
# Deterministic parameter initialization (per-part, mirrors the PyTorch module)
# ----------------------------------------------------------------------------
def init_params(key):
    keys = jax.random.split(key, 2 + 4 * P)
    w_b = jax.random.normal(keys[0], (C_IN, C_FEAT), jnp.float32) * 0.2
    b_b = jax.random.normal(keys[1], (C_FEAT,), jnp.float32) * 0.1
    w_r, b_r, w_h, b_h = [], [], [], []
    for p, kpts in enumerate(PARTS.values()):
        kp = len(kpts)
        w_r.append(jax.random.normal(keys[2 + 4 * p], (C_FEAT, C_CELL), jnp.float32) * 0.1)
        b_r.append(jax.random.normal(keys[3 + 4 * p], (C_CELL,), jnp.float32) * 0.1)
        w_h.append(jax.random.normal(keys[4 + 4 * p], (C_CELL, kp), jnp.float32) * 0.1)
        b_h.append(jax.random.normal(keys[5 + 4 * p], (kp,), jnp.float32) * 0.1)
    return dict(w_b=w_b, b_b=b_b, w_r=w_r, b_r=b_r, w_h=w_h, b_h=b_h)


def prepare_fused_params(params):
    """Host-side, one-time folding of per-part weights into dense matrices."""
    w_b, b_b = np.asarray(params["w_b"]), np.asarray(params["b_b"])
    w_r, b_r = params["w_r"], params["b_r"]
    w_h, b_h = params["w_h"], params["b_h"]

    # 4x4 average pool (+ HxW -> H4*W4 flattening) as a single (HW, S) matmul
    pool = np.zeros((HW, S), np.float32)
    for hh in range(H):
        for ww in range(W):
            pool[hh * W + ww, (hh // 4) * W4 + (ww // 4)] = 1.0 / 16.0

    wbt = w_b.T                                    # (C_FEAT, C_IN)
    bb = b_b.reshape(C_FEAT, 1)

    wr_cat = np.concatenate([np.asarray(wi) for wi in w_r], axis=1)  # (C_FEAT, C_RED)
    br_cat = np.concatenate([np.asarray(bi) for bi in b_r])          # (C_RED,)
    wrt = wr_cat.T                                 # (C_RED, C_FEAT)
    br = br_cat.reshape(C_RED, 1)

    # block-diagonal head weight + 0/1 keypoint scatter + sum over parts,
    # folded into one dense matrix.  Exact because keypoints are disjoint
    # across parts (the "sum == placement" assumption).
    k_tot = sum(len(v) for v in PARTS.values())
    wh_bd = np.zeros((C_RED, k_tot), np.float32)
    bh_cat = np.zeros((k_tot,), np.float32)
    scat = np.zeros((k_tot, OUT_DIM), np.float32)
    col = 0
    for p, kpts in enumerate(PARTS.values()):
        kp = len(kpts)
        wh_bd[p * C_CELL:(p + 1) * C_CELL, col:col + kp] = np.asarray(w_h[p])
        bh_cat[col:col + kp] = np.asarray(b_h[p])
        for j, k in enumerate(kpts):
            scat[col + j, k] = 1.0
        col += kp
    whst = (wh_bd @ scat).T                        # (OUT_DIM, C_RED)
    bhs = (bh_cat @ scat).reshape(OUT_DIM, 1)      # (OUT_DIM, 1)

    to_j = lambda a: jnp.asarray(a, jnp.float32)
    return tuple(map(to_j, (pool, wbt, bb, wrt, br, whst, bhs)))


# ----------------------------------------------------------------------------
# Pure-JAX reference (mirrors the PyTorch per-part forward semantics)
# ----------------------------------------------------------------------------
def reference_forward(x_nchw, params):
    w_b, b_b = params["w_b"], params["b_b"]
    w_r, b_r = params["w_r"], params["b_r"]
    w_h, b_h = params["w_h"], params["b_h"]

    # backbone stand-in: 4x4 avg pool + 1x1 conv + ReLU (channel-last math)
    xp = x_nchw.reshape(B, C_IN, H4, 4, W4, 4).mean(axis=(3, 5))      # (B,C,H4,W4)
    xr = jnp.transpose(xp, (0, 2, 3, 1)).reshape(B * S, C_IN)          # (M, C_IN)
    feat = jnp.maximum(xr @ w_b + b_b, 0.0)                            # (M, C_FEAT)

    # all_part_outputs[id, :, parts[name], :, :] = Sub_Arch(reduce(feature))
    all_parts = jnp.zeros((P, B * S, OUT_DIM), jnp.float32)
    for p, kpts in enumerate(PARTS.values()):
        hred = feat @ w_r[p] + b_r[p]
        y = jnp.maximum(hred, 0.0) @ w_h[p] + b_h[p]                   # (M, k_p)
        scat_p = np.zeros((len(kpts), OUT_DIM), np.float32)
        scat_p[np.arange(len(kpts)), kpts] = 1.0
        all_parts = all_parts.at[p].set(y @ jnp.asarray(scat_p))
    out_flat = all_parts.sum(axis=0)               # torch.sum(all_part_outputs, dim=0)
    out = out_flat.reshape(B, H4, W4, OUT_DIM)
    return jnp.transpose(out, (0, 3, 1, 2))


# ----------------------------------------------------------------------------
# Main
# ----------------------------------------------------------------------------
if __name__ == "__main__":
    key = jax.random.PRNGKey(0)
    k_x, k_p = jax.random.split(key)
    x = jax.random.normal(k_x, (B, C_IN, H, W), jnp.float32)

    params = init_params(k_p)
    fused_params = prepare_fused_params(params)

    out = body_parts_forward(x, fused_params)
    out = jax.block_until_ready(out)

    ref = reference_forward(x, params)
    assert out.shape == (B, OUT_DIM, H4, W4), out.shape
    # small slack for MXU f32 multi-pass rounding vs. the XLA reference path
    assert jnp.allclose(out, ref, atol=2e-4, rtol=2e-4), \
        f"max abs diff {jnp.max(jnp.abs(out - ref))}"

    print("KERNEL_OK")
</pallas_src>

<mosaic_0001>
module attributes {stable_mosaic.version = 11 : i64} {
  func.func @fused_kernel(%arg0: memref<2x3x256xf32, #tpu.memory_space<vmem>>, %arg1: memref<256x16xf32, #tpu.memory_space<vmem>>, %arg2: memref<32x3xf32, #tpu.memory_space<vmem>>, %arg3: memref<32x1xf32, #tpu.memory_space<vmem>>, %arg4: memref<80x32xf32, #tpu.memory_space<vmem>>, %arg5: memref<80x1xf32, #tpu.memory_space<vmem>>, %arg6: memref<17x80xf32, #tpu.memory_space<vmem>>, %arg7: memref<17x1xf32, #tpu.memory_space<vmem>>, %arg8: memref<2x17x16xf32, #tpu.memory_space<vmem>>) attributes {dimension_semantics = [], scalar_prefetch = 0 : i64, scratch_operands = 0 : i64, tpu.core_type = #tpu.core_type<tc>} {
    %c0 = arith.constant 0 : index
    %c0_0 = arith.constant 0 : index
    %0 = vector.load %arg1[%c0, %c0_0] : memref<256x16xf32, #tpu.memory_space<vmem>>, vector<256x16xf32>
    %c0_1 = arith.constant 0 : index
    %c0_2 = arith.constant 0 : index
    %1 = vector.load %arg2[%c0_1, %c0_2] : memref<32x3xf32, #tpu.memory_space<vmem>>, vector<32x3xf32>
    %c0_3 = arith.constant 0 : index
    %c0_4 = arith.constant 0 : index
    %2 = vector.load %arg3[%c0_3, %c0_4] : memref<32x1xf32, #tpu.memory_space<vmem>>, vector<32x1xf32>
    %c0_5 = arith.constant 0 : index
    %c0_6 = arith.constant 0 : index
    %3 = vector.load %arg4[%c0_5, %c0_6] : memref<80x32xf32, #tpu.memory_space<vmem>>, vector<80x32xf32>
    %c0_7 = arith.constant 0 : index
    %c0_8 = arith.constant 0 : index
    %4 = vector.load %arg5[%c0_7, %c0_8] : memref<80x1xf32, #tpu.memory_space<vmem>>, vector<80x1xf32>
    %c0_9 = arith.constant 0 : index
    %c0_10 = arith.constant 0 : index
    %5 = vector.load %arg6[%c0_9, %c0_10] : memref<17x80xf32, #tpu.memory_space<vmem>>, vector<17x80xf32>
    %c0_11 = arith.constant 0 : index
    %c0_12 = arith.constant 0 : index
    %6 = vector.load %arg7[%c0_11, %c0_12] : memref<17x1xf32, #tpu.memory_space<vmem>>, vector<17x1xf32>
    %c0_13 = arith.constant 0 : index
    %c0_14 = arith.constant 0 : index
    %c0_15 = arith.constant 0 : index
    %7 = vector.load %arg0[%c0_13, %c0_14, %c0_15] : memref<2x3x256xf32, #tpu.memory_space<vmem>>, vector<1x3x256xf32>
    %8 = vector.shape_cast %7 : vector<1x3x256xf32> to vector<3x256xf32>
    %cst = arith.constant dense<0.000000e+00> : vector<3x16xf32>
    %9 = tpu.matmul %8, %0, %cst {dimension_numbers = #tpu.dot_dimension_numbers<[1], [0], [0], [1], [0, 0, 1, 1], [], []>} : vector<3x256xf32>, vector<256x16xf32>, vector<3x16xf32> -> vector<3x16xf32>
    %cst_16 = arith.constant dense<0.000000e+00> : vector<32x16xf32>
    %10 = tpu.matmul %1, %9, %cst_16 {dimension_numbers = #tpu.dot_dimension_numbers<[1], [0], [0], [1], [0, 0, 1, 1], [], []>} : vector<32x3xf32>, vector<3x16xf32>, vector<32x16xf32> -> vector<32x16xf32>
    %11 = vector.broadcast %2 : vector<32x1xf32> to vector<32x16xf32>
    %12 = arith.addf %10, %11 : vector<32x16xf32>
    %cst_17 = arith.constant 0.000000e+00 : f32
    %13 = vector.broadcast %cst_17 : f32 to vector<32x16xf32>
    %14 = arith.maximumf %12, %13 : vector<32x16xf32>
    %cst_18 = arith.constant dense<0.000000e+00> : vector<80x16xf32>
    %15 = tpu.matmul %3, %14, %cst_18 {dimension_numbers = #tpu.dot_dimension_numbers<[1], [0], [0], [1], [0, 0, 1, 1], [], []>} : vector<80x32xf32>, vector<32x16xf32>, vector<80x16xf32> -> vector<80x16xf32>
    %16 = vector.broadcast %4 : vector<80x1xf32> to vector<80x16xf32>
    %17 = arith.addf %15, %16 : vector<80x16xf32>
    %cst_19 = arith.constant 0.000000e+00 : f32
    %18 = vector.broadcast %cst_19 : f32 to vector<80x16xf32>
    %19 = arith.maximumf %17, %18 : vector<80x16xf32>
    %cst_20 = arith.constant dense<0.000000e+00> : vector<17x16xf32>
    %20 = tpu.matmul %5, %19, %cst_20 {dimension_numbers = #tpu.dot_dimension_numbers<[1], [0], [0], [1], [0, 0, 1, 1], [], []>} : vector<17x80xf32>, vector<80x16xf32>, vector<17x16xf32> -> vector<17x16xf32>
    %21 = vector.broadcast %6 : vector<17x1xf32> to vector<17x16xf32>
    %22 = arith.addf %20, %21 : vector<17x16xf32>
    %c0_21 = arith.constant 0 : index
    %c0_22 = arith.constant 0 : index
    %c0_23 = arith.constant 0 : index
    %23 = vector.load %arg8[%c0_21, %c0_22, %c0_23] : memref<2x17x16xf32, #tpu.memory_space<vmem>>, vector<1x17x16xf32>
    %24 = vector.shape_cast %23 : vector<1x17x16xf32> to vector<17x16xf32>
    %25 = vector.shape_cast %22 : vector<17x16xf32> to vector<1x17x16xf32>
    tpu.vector_store %arg8[%c0_21, %c0_22, %c0_23], %25 {strides = array<i32>} : memref<2x17x16xf32, #tpu.memory_space<vmem>>, vector<1x17x16xf32>,
    %c1 = arith.constant 1 : index
    %c0_24 = arith.constant 0 : index
    %c0_25 = arith.constant 0 : index
    %26 = vector.load %arg0[%c1, %c0_24, %c0_25] : memref<2x3x256xf32, #tpu.memory_space<vmem>>, vector<1x3x256xf32>
    %27 = vector.shape_cast %26 : vector<1x3x256xf32> to vector<3x256xf32>
    %cst_26 = arith.constant dense<0.000000e+00> : vector<3x16xf32>
    %28 = tpu.matmul %27, %0, %cst_26 {dimension_numbers = #tpu.dot_dimension_numbers<[1], [0], [0], [1], [0, 0, 1, 1], [], []>} : vector<3x256xf32>, vector<256x16xf32>, vector<3x16xf32> -> vector<3x16xf32>
    %cst_27 = arith.constant dense<0.000000e+00> : vector<32x16xf32>
    %29 = tpu.matmul %1, %28, %cst_27 {dimension_numbers = #tpu.dot_dimension_numbers<[1], [0], [0], [1], [0, 0, 1, 1], [], []>} : vector<32x3xf32>, vector<3x16xf32>, vector<32x16xf32> -> vector<32x16xf32>
    %30 = vector.broadcast %2 : vector<32x1xf32> to vector<32x16xf32>
    %31 = arith.addf %29, %30 : vector<32x16xf32>
    %cst_28 = arith.constant 0.000000e+00 : f32
    %32 = vector.broadcast %cst_28 : f32 to vector<32x16xf32>
    %33 = arith.maximumf %31, %32 : vector<32x16xf32>
    %cst_29 = arith.constant dense<0.000000e+00> : vector<80x16xf32>
    %34 = tpu.matmul %3, %33, %cst_29 {dimension_numbers = #tpu.dot_dimension_numbers<[1], [0], [0], [1], [0, 0, 1, 1], [], []>} : vector<80x32xf32>, vector<32x16xf32>, vector<80x16xf32> -> vector<80x16xf32>
    %35 = vector.broadcast %4 : vector<80x1xf32> to vector<80x16xf32>
    %36 = arith.addf %34, %35 : vector<80x16xf32>
    %cst_30 = arith.constant 0.000000e+00 : f32
    %37 = vector.broadcast %cst_30 : f32 to vector<80x16xf32>
    %38 = arith.maximumf %36, %37 : vector<80x16xf32>
    %cst_31 = arith.constant dense<0.000000e+00> : vector<17x16xf32>
    %39 = tpu.matmul %5, %38, %cst_31 {dimension_numbers = #tpu.dot_dimension_numbers<[1], [0], [0], [1], [0, 0, 1, 1], [], []>} : vector<17x80xf32>, vector<80x16xf32>, vector<17x16xf32> -> vector<17x16xf32>
    %40 = vector.broadcast %6 : vector<17x1xf32> to vector<17x16xf32>
    %41 = arith.addf %39, %40 : vector<17x16xf32>
    %c1_32 = arith.constant 1 : index
    %c0_33 = arith.constant 0 : index
    %c0_34 = arith.constant 0 : index
    %42 = vector.load %arg8[%c1_32, %c0_33, %c0_34] : memref<2x17x16xf32, #tpu.memory_space<vmem>>, vector<1x17x16xf32>
    %43 = vector.shape_cast %42 : vector<1x17x16xf32> to vector<17x16xf32>
    %44 = vector.shape_cast %41 : vector<17x16xf32> to vector<1x17x16xf32>
    tpu.vector_store %arg8[%c1_32, %c0_33, %c0_34], %44 {strides = array<i32>} : memref<2x17x16xf32, #tpu.memory_space<vmem>>, vector<1x17x16xf32>,
    return
  }
}

</mosaic_0001>

<bundles_post_ra>
// kernel: body_parts_forward.1
= control target key start
LH: loop header
LB: loop body
LE: loop exit
PB: predicated region body
PF: predicated region fallthrough
CT: control target
= control target key end

     0   :  { %v629_v5 = vmov 0   ;;  %vm175_vm0 = vcmask 1042432   ;;  %vm162_vm1 = vcmask 23552   ;;  %vm262_vm2 = vcmask 261120   ;;  %s1155_s1 = inlined_call_operand.vmem [shape: f32[256,16], index: 1, kind: input, shape index: {}]   ;;  %s1156_s0 = inlined_call_operand.vmem [shape: f32[2,3,256], index: 0, kind: input, shape index: {}]   ;;  %s1157_s3 = inlined_call_operand.vmem [shape: f32[32,1], index: 3, kind: input, shape index: {}]   ;;  %s1158_s5 = inlined_call_operand.vmem [shape: f32[80,1], index: 5, kind: input, shape index: {}]   ;;  %s1159_s2 = inlined_call_operand.vmem [shape: f32[32,3], index: 2, kind: input, shape index: {}]   ;;  %s1160_s7 = inlined_call_operand.vmem [shape: f32[17,1], index: 7, kind: input, shape index: {}]   ;;  %s1161_s4 = inlined_call_operand.vmem [shape: f32[80,32], index: 4, kind: input, shape index: {}]   ;;  %s1162_s6 = inlined_call_operand.vmem [shape: f32[17,80], index: 6, kind: input, shape index: {}]   ;;  %s1163_s8 = inlined_call_operand.vmem [shape: f32[2,17,16], index: 8, kind: output, shape index: {}]  }
   0x1   :  { %v678_v0 = vld [vmem:[%s1155_s1 + $0x78] sm:$0xff]  ;;  %v683_v1 = vld [vmem:[%s1155_s1 + $0x70] sm:$0xff]  ;;  %v694_v3 = vld [vmem:[%s1155_s1 + $0x68] sm:$0xff]  ;;  %626 = vset.pattern.permute.xlu0 %v629_v5  ;;  %627 = vset.pattern.permute.xlu1 %v629_v5  ;;  %vm365_vm3 = vcmask 654336   ;;  %vm401_vm4 = vcmask 130048   ;;  %vm404_vm5 = vcmask 122880  }
   0x2   :  { %102 = vmatpush.msra.mxu3 %v678_v0  ;;  %v689_v2 = vld [vmem:[%s1155_s1 + $0xf8] sm:$0xff]  ;;  %v700_v4 = vld [vmem:[%s1155_s1 + $0xf0] sm:$0xff]  ;;  %v706_v6 = vld [vmem:[%s1155_s1 + $0xe8] sm:$0xff]  ;;  %628 = vset.pattern.permute.xlu2 %v629_v5 }
   0x3   :  { %122 = vmatpush.msra.mxu1 %v689_v2  ;;  %v711_v7 = vld [vmem:[%s1155_s1 + $0x60] sm:$0xff]  ;;  %v723_v9 = vld [vmem:[%s1155_s1 + $0x58] sm:$0xff]  ;;  %v733_v11 = vld [vmem:[%s1155_s1 + $0x50] sm:$0xff] }
   0x4   :  { %103 = vmatpush.msra.mxu3 %v683_v1  ;;  %v718_v8 = vld [vmem:[%s1155_s1 + $0xe0] sm:$0xff]  ;;  %v56_v10 = vld [vmem:[%s1155_s1 + $0xd8] sm:$0xff]  ;;  %v55_v12 = vld [vmem:[%s1155_s1 + $0xd0] sm:$0xff] }
   0x5   :  { %123 = vmatpush.msra.mxu1 %v700_v4  ;;  %v95_v13 = vld [vmem:[%s1156_s0] sm:$0x77]  ;;  %v746_v14 = vld [vmem:[%s1155_s1 + $0x48] sm:$0xff]  ;;  %v68_v16 = vld [vmem:[%s1157_s3 + $0x18] sm:$0xff] }
   0x6   :  { %104 = vmatpush.msra.mxu3 %v694_v3  ;;  %97 = vst [vmem:[#allocation1] ss:$2 sm:$0xff] %v95_v13  ;;  %v54_v15 = vld [vmem:[%s1155_s1 + $0xc8] sm:$0xff]  ;;  %v758_v17 = vld [vmem:[%s1155_s1 + $0x40] sm:$0xff]  ;;  %159 = vperm.xlu0 %626, %v68_v16   ;;  %v767_v19 = vld [vmem:[%s1155_s1 + $0x38] sm:$0xff] }
   0x7   :  { %124 = vmatpush.msra.mxu1 %v706_v6  ;;  %v53_v18 = vld [vmem:[%s1155_s1 + $0xc0] sm:$0xff]  ;;  %v52_v20 = vld [vmem:[%s1155_s1 + $0xb8] sm:$0xff]  ;;  %v599_v21 = vld [vmem:[%s1156_s0 + $0x8] sm:$0x77] }
   0x8   :  { %105 = vmatpush.msra.mxu3 %v711_v7  ;;  %v779_v22 = vld [vmem:[%s1155_s1 + $0x30] sm:$0xff]  ;;  %v788_v26 = vld [vmem:[%s1155_s1 + $0x28] sm:$0xff]  ;;  %v797_v28 = vld [vmem:[%s1155_s1 + $0x20] sm:$0xff] }
   0x9   :  { %125 = vmatpush.msra.mxu1 %v718_v8  ;;  %v51_v23 = vld [vmem:[%s1155_s1 + $0xb0] sm:$0xff]  ;;  %v50_v27 = vld [vmem:[%s1155_s1 + $0xa8] sm:$0xff]  ;;  %v49_v29 = vld [vmem:[%s1155_s1 + $0xa0] sm:$0xff] }
   0xa   :  { %106 = vmatpush.msra.mxu3 %v723_v9  ;;  %v806_v30 = vld [vmem:[%s1155_s1 + $0x18] sm:$0xff]  ;;  %v815_v32 = vld [vmem:[%s1155_s1 + $0x10] sm:$0xff]  ;;  %v824_v34 = vld [vmem:[%s1155_s1 + $0x8] sm:$0xff] }
   0xb   :  { %126 = vmatpush.msra.mxu1 %v56_v10  ;;  %v48_v31 = vld [vmem:[%s1155_s1 + $0x98] sm:$0xff]  ;;  %v47_v33 = vld [vmem:[%s1155_s1 + $0x90] sm:$0xff]  ;;  %v46_v35 = vld [vmem:[%s1155_s1 + $0x88] sm:$0xff] }
   0xc   :  { %107 = vmatpush.msra.mxu3 %v733_v11  ;;  %v833_v36 = vld [vmem:[%s1155_s1] sm:$0xff]  ;;  %v66_v38 = vld [vmem:[%s1157_s3 + $0x8] sm:$0xff]  ;;  %v67_v39 = vld [vmem:[%s1157_s3 + $0x10] sm:$0xff] }
   0xd   :  { %127 = vmatpush.msra.mxu1 %v55_v12  ;;  %v98_v24 = vld.sshfl [vmem:[#allocation1] sm:$0xff pattern:$0x75316420]  ;;  %v99_v25 = vld.sshfl [vmem:[#allocation1 + $0x8] sm:$0xff pattern:$0x75316420]  ;;  %149 = vperm.xlu1 %627, %v66_v38  }
   0xe   :  { %108 = vmatpush.msra.mxu3 %v746_v14  ;;  %409 = vst [vmem:[#allocation1] ss:$2 sm:$0xff] %v599_v21  ;;  %v45_v37 = vld [vmem:[%s1155_s1 + $0x80] sm:$0xff]  ;;  %154 = vperm.xlu0 %626, %v67_v39   ;;  %v86_v41 = vld [vmem:[%s1158_s5 + $0x38] sm:$0xff]  ;;  %v85_v42 = vld [vmem:[%s1158_s5 + $0x30] sm:$0xff] }
   0xf   :  { %128 = vmatpush.msra.mxu1 %v54_v15  ;;  %v65_v40 = vld [vmem:[%s1157_s3] sm:$0xff]  ;;  %v82_v44 = vld [vmem:[%s1158_s5 + $0x18] sm:$0xff]  ;;  %v80_v45 = vld [vmem:[%s1158_s5 + $0x8] sm:$0xff] }
  0x10   :  { %109 = vmatpush.msra.mxu3 %v758_v17  ;;  %v83_v43 = vld [vmem:[%s1158_s5 + $0x20] sm:$0xff]  ;;  %v93_v51 = vld [vmem:[%s1160_s7 + $0x8] sm:$0xff]  ;;  %v94_v52 = vld [vmem:[%s1160_s7 + $0x10] sm:$0x1] }
  0x11   :  { %129 = vmatpush.msra.mxu1 %v53_v18  ;;  %v79_v47 = vld [vmem:[%s1158_s5] sm:$0xff]  ;;  %v888_v53 = vld [vmem:[%s1159_s2 + $0x8] sm:$0xff]  ;;  %v895_v54 = vld [vmem:[%s1159_s2 + $0x10] sm:$0xff] }
  0x12   :  { %110 = vmatpush.msra.mxu3 %v767_v19  ;;  %v874_v50 = vld [vmem:[%s1159_s2] sm:$0xff]  ;;  %v902_v55 = vld [vmem:[%s1159_s2 + $0x18] sm:$0xff]  ;;  %v941_v21 = vld [vmem:[%s1161_s4 + $0x10] sm:$0xff] }
  0x13   :  { %130 = vmatpush.msra.mxu1 %v52_v20  ;;  %v924_v16 = vld [vmem:[%s1161_s4] sm:$0xff]  ;;  %v999_v38 = vld [vmem:[%s1161_s4 + $0x48] sm:$0xff] }
  0x14   :  { %111 = vmatpush.msra.mxu3 %v779_v22 }
  0x15   :  { %131 = vmatpush.msra.mxu1 %v51_v23  ;;  %144 = vperm.xlu1 %627, %v65_v40  }
  0x16   :  { %112 = vmatpush.msra.mxu3 %v788_v26  ;;  %249 = vperm.xlu0 %626, %v86_v41  }
  0x17   :  { %132 = vmatpush.msra.mxu1 %v50_v27 }
  0x18   :  { %113 = vmatpush.msra.mxu3 %v797_v28 }
  0x19   :  { %133 = vmatpush.msra.mxu1 %v49_v29 }
  0x1a   :  { %114 = vmatpush.msra.mxu3 %v806_v30 }
  0x1b   :  { %134 = vmatpush.msra.mxu1 %v48_v31 }
  0x1c   :  { %115 = vmatpush.msra.mxu3 %v815_v32 }
  0x1d   :  { %135 = vmatpush.msra.mxu1 %v47_v33  ;;  %244 = vperm.xlu1 %627, %v85_v42  }
  0x1e   :  { %116 = vmatpush.msra.mxu3 %v824_v34  ;;  %234 = vperm.xlu0 %626, %v83_v43  }
  0x1f   :  { %136 = vmatpush.msra.mxu1 %v46_v35 }
  0x20   :  { %117 = vmatpush.msra.mxu3 %v833_v36 }
  0x21   :  { %118 = vmatmul.f32.vlgmr.msra.gmra.mxu3 %v98_v24  ;;  %137 = vmatpush.msra.mxu1 %v45_v37  ;;  %v951_v24 = vld [vmem:[%s1161_s4 + $0x18] sm:$0xff] }
  0x22   :  { %138 = vmatmul.f32.vlgmr.msra.gmra.mxu1 %v99_v25  ;;  %v81_v25 = vld [vmem:[%s1158_s5 + $0x10] sm:$0xff] }
  0x23   :  { %434 = vmatpush.msrb.mxu1 %v689_v2 }
  0x25   :  { %435 = vmatpush.msrb.mxu1 %v700_v4  ;;  %229 = vperm.xlu1 %627, %v82_v44  }
  0x26   :  { %219 = vperm.xlu0 %626, %v80_v45  }
  0x27   :  { %436 = vmatpush.msrb.mxu1 %v706_v6 }
  0x29   :  { %437 = vmatpush.msrb.mxu1 %v718_v8  ;;  %v88_v8 = vld [vmem:[%s1158_s5 + $0x48] sm:$0xff] }
  0x2a   :  { %259 = vperm.xlu2 %628, %v88_v8  }
  0x2b   :  { %438 = vmatpush.msrb.mxu1 %v56_v10 }
  0x2d   :  { %439 = vmatpush.msrb.mxu1 %v55_v12  ;;  %214 = vperm.xlu1 %627, %v79_v47  }
  0x2e   :  { %357 = vperm.xlu0 %626, %v93_v51  }
  0x2f   :  { %440 = vmatpush.msrb.mxu1 %v54_v15 }
  0x31   :  { %441 = vmatpush.msrb.mxu1 %v53_v18  ;;  %v929_v18 = vld [vmem:[%s1161_s4 + $0x8] sm:$0xff] }
  0x33   :  { %442 = vmatpush.msrb.mxu1 %v52_v20  ;;  %v87_v20 = vld [vmem:[%s1158_s5 + $0x40] sm:$0xff] }
  0x34   :  { %254 = vperm.xlu2 %628, %v87_v20  }
  0x35   :  { %443 = vmatpush.msrb.mxu1 %v51_v23  ;;  %362 = vperm.xlu1 %627, %v94_v52   ;;  %v84_v23 = vld [vmem:[%s1158_s5 + $0x28] sm:$0xff] }
  0x37   :  { %444 = vmatpush.msrb.mxu1 %v50_v27  ;;  %v961_v27 = vld [vmem:[%s1161_s4 + $0x20] sm:$0xff] }
  0x39   :  { %445 = vmatpush.msrb.mxu1 %v49_v29  ;;  %v968_v29 = vld [vmem:[%s1161_s4 + $0x28] sm:$0xff] }
  0x3b   :  { %446 = vmatpush.msrb.mxu1 %v48_v31  ;;  %v92_v31 = vld [vmem:[%s1160_s7] sm:$0xff] }
  0x3c   :  { %239 = vperm.xlu2 %628, %v84_v23  }
  0x3d   :  { %447 = vmatpush.msrb.mxu1 %v47_v33  ;;  %v978_v33 = vld [vmem:[%s1161_s4 + $0x30] sm:$0xff] }
  0x3f   :  { %448 = vmatpush.msrb.mxu1 %v46_v35  ;;  %v985_v35 = vld [vmem:[%s1161_s4 + $0x38] sm:$0xff] }
  0x41   :  { %449 = vmatpush.msrb.mxu1 %v45_v37  ;;  %v992_v37 = vld [vmem:[%s1161_s4 + $0x40] sm:$0xff] }
  0x44   :  { %224 = vperm.xlu2 %628, %v81_v25  }
  0x4c   :  { %352 = vperm.xlu2 %628, %v92_v31  }
  0x78   :  { %v906_v58 = vpop.permute.xlu0 %159 }
  0x7f   :  { %v908_v60 = vpop.permute.xlu1 %149 }
  0x80   :  { %v910_v61 = vpop.permute.xlu0 %154 }
  0x84   :  { %v1003_v45 = vpop.permute.xlu2 %259 }
  0x87   :  { %v915_v6 = vpop.permute.xlu1 %144 }
  0x8e   :  { %v1005_v47 = vpop.permute.xlu2 %254 }
  0x8f   :  { %v1009_v51 = vpop.permute.xlu1 %244 }
  0x96   :  { %v1011_v52 = vpop.permute.xlu2 %239 }
  0x97   :  { %v1019_v8 = vpop.permute.xlu1 %229 }
  0x9e   :  { %v1023_v20 = vpop.permute.xlu2 %224 }
  0x9f   :  { %v139_v46 = vpop.f32.mrf.mxu1 }
  0xa4   :  { %v119_v48 = vpop.f32.mrf.mxu3 }
  0xa5   :  { %v140_v49 = vadd.f32 %v139_v46, %v119_v48 }
  0xa7   :  { %581 = vmatpush.msk.msra.mxu2 %vm175_vm0, %v140_v49  ;;  %v1007_v49 = vpop.permute.xlu0 %249 }
  0xa8   :  { %582 = vmatmul.msk.f32.vlgmr.msra.gmra.mxu2 %vm162_vm1, %v874_v50 }
  0xb0   :  { %583 = vmatmul.msk.f32.gmra.mxu2 %vm162_vm1, %v888_v53 }
  0xb8   :  { %584 = vmatmul.msk.f32.gmra.mxu2 %vm162_vm1, %v895_v54 }
  0xc0   :  { %585 = vmatmul.msk.f32.gmra.mxu2 %vm162_vm1, %v902_v55 }
 0x12b   :  { %v196_v56 = vpop.f32.mrf.mxu2 }
 0x12c   :  { %v197_v10 = vadd.f32 %v196_v56, %v915_v6 }
 0x12e   :  { %v208_v15 = vmax.f32 %v197_v10, 0.0 }
 0x133   :  { %v199_v57 = vpop.f32.mrf.mxu2 }
 0x134   :  { %v200_v4 = vadd.f32 %v199_v57, %v908_v60 }
 0x136   :  { %v209_v13 = vmax.f32 %v200_v4, 0.0 }
 0x13b   :  { %v202_v59 = vpop.f32.mrf.mxu2 }
 0x13c   :  { %v203_v63 = vadd.f32 %v202_v59, %v910_v61 }
 0x13e   :  { %v210_v12 = vmax.f32 %v203_v63, 0.0 }
 0x143   :  { %v205_v62 = vpop.f32.mrf.mxu2 }
 0x144   :  { %v206_v2 = vadd.f32 %v205_v62, %v906_v58 }
 0x146   :  { %v211_v5 = vmax.f32 %v206_v2, 0.0  ;;  %v1016_v2 = vpop.permute.xlu0 %234 }
 0x148   :  { %305 = vmatpush.msra.mxu0 %v211_v5  ;;  %621 = vmatpush.msrb.mxu3 %v211_v5 }
 0x14a   :  { %306 = vmatpush.msra.mxu0 %v210_v12  ;;  %622 = vmatpush.msrb.mxu3 %v210_v12 }
 0x14c   :  { %307 = vmatpush.msra.mxu0 %v209_v13  ;;  %623 = vmatpush.msrb.mxu3 %v209_v13 }
 0x14e   :  { %308 = vmatpush.msra.mxu0 %v208_v15  ;;  %624 = vmatpush.msrb.mxu3 %v208_v15 }
 0x14f   :  { %586 = vmatmul.msk.f32.vlgmr.msra.gmra.mxu0 %vm262_vm2, %v924_v16  ;;  %587 = vmatmul.msk.f32.vlgmr.msrb.gmra.mxu3 %vm262_vm2, %v929_v18 }
 0x157   :  { %588 = vmatmul.msk.f32.gmra.mxu3 %vm262_vm2, %v941_v21 }
 0x15f   :  { %589 = vmatmul.msk.f32.gmra.mxu3 %vm262_vm2, %v951_v24 }
 0x167   :  { %590 = vmatmul.msk.f32.gmra.mxu3 %vm262_vm2, %v961_v27 }
 0x16f   :  { %591 = vmatmul.msk.f32.gmra.mxu3 %vm262_vm2, %v968_v29 }
 0x177   :  { %592 = vmatmul.msk.f32.gmra.mxu3 %vm262_vm2, %v978_v33 }
 0x17f   :  { %593 = vmatmul.msk.f32.gmra.mxu3 %vm262_vm2, %v985_v35 }
 0x187   :  { %594 = vmatmul.msk.f32.gmra.mxu3 %vm262_vm2, %v992_v37 }
 0x18f   :  { %595 = vmatmul.msk.f32.gmra.mxu3 %vm262_vm2, %v999_v38 }
 0x1d2   :  { %v313_v39 = vpop.f32.mrf.mxu3 }
 0x1da   :  { %v316_v40 = vpop.f32.mrf.mxu3 }
 0x1db   :  { %v317_v31 = vadd.f32 %v316_v40, %v1023_v20  ;;  %v1036_v40 = vld [vmem:[%s1162_s6] sm:$0xff] }
 0x1e2   :  { %v319_v41 = vpop.f32.mrf.mxu3 }
 0x1e3   :  { %v320_v23 = vadd.f32 %v319_v41, %v1019_v8 }
 0x1ea   :  { %v322_v42 = vpop.f32.mrf.mxu3 }
 0x1eb   :  { %v323_v13 = vadd.f32 %v322_v42, %v1016_v2  ;;  %v1030_v42 = vpop.permute.xlu1 %214 }
 0x1f2   :  { %v325_v43 = vpop.f32.mrf.mxu3 }
 0x1f3   :  { %v326_v10 = vadd.f32 %v325_v43, %v1011_v52 }
 0x1f5   :  { %v345_v25 = vmax.f32 %v326_v10, 0.0 }
 0x1fa   :  { %v328_v44 = vpop.f32.mrf.mxu3 }
 0x1fb   :  { %v329_v4 = vadd.f32 %v328_v44, %v1009_v51  ;;  %v344_v44 = vmax.f32 %v323_v13, 0.0 }
 0x1fd   :  { %v346_v15 = vmax.f32 %v329_v4, 0.0 }
 0x202   :  { %v331_v46 = vpop.f32.mrf.mxu3 }
 0x203   :  { %v332_v62 = vadd.f32 %v331_v46, %v1007_v49  ;;  %v1027_v46 = vpop.permute.xlu0 %219 }
 0x204   :  { %v314_v43 = vadd.f32 %v313_v39, %v1027_v46  ;;  %v411_v39 = vld.sshfl [vmem:[#allocation1 + $0x8] sm:$0xff pattern:$0x75316420] }
 0x205   :  { %v347_v12 = vmax.f32 %v332_v62, 0.0  ;;  %450 = vmatmul.f32.vlgmr.msrb.gmra.mxu1 %v411_v39 }
 0x206   :  { %v341_v41 = vmax.f32 %v314_v43, 0.0 }
 0x20a   :  { %v334_v48 = vpop.f32.mrf.mxu3 }
 0x20b   :  { %v335_v57 = vadd.f32 %v334_v48, %v1005_v47  ;;  %v310_v48 = vpop.f32.mrf.mxu0 }
 0x20d   :  { %v348_v5 = vmax.f32 %v335_v57, 0.0  ;;  %v311_v57 = vadd.f32 %v310_v48, %v1030_v42 }
 0x20f   :  { %v340_v62 = vmax.f32 %v311_v57, 0.0 }
 0x212   :  { %v337_v56 = vpop.f32.mrf.mxu3 }
 0x213   :  { %v338_v59 = vadd.f32 %v337_v56, %v1003_v45  ;;  %v343_v56 = vmax.f32 %v320_v23, 0.0 }
 0x215   :  { %v349_v63 = vmax.f32 %v338_v59, 0.0  ;;  %v342_v59 = vmax.f32 %v317_v31, 0.0 }
 0x217   :  { %381 = vmatpush.msrb.mxu2 %v349_v63  ;;  %v1046_v63 = vld [vmem:[%s1162_s6 + $0x8] sm:$0xff] }
 0x219   :  { %382 = vmatpush.msrb.mxu2 %v348_v5 }
 0x21b   :  { %383 = vmatpush.msrb.mxu2 %v347_v12 }
 0x21d   :  { %384 = vmatpush.msrb.mxu2 %v346_v15 }
 0x21f   :  { %385 = vmatpush.msrb.mxu2 %v345_v25 }
 0x221   :  { %386 = vmatpush.msrb.mxu2 %v344_v44 }
 0x223   :  { %387 = vmatpush.msrb.mxu2 %v343_v56 }
 0x225   :  { %388 = vmatpush.msrb.mxu2 %v342_v59 }
 0x227   :  { %389 = vmatpush.msrb.mxu2 %v341_v41 }
 0x229   :  { %390 = vmatpush.msrb.mxu2 %v340_v62 }
 0x22a   :  { %596 = vmatmul.msk.f32.vlgmr.msrb.gmra.mxu2 %vm365_vm3, %v1036_v40 }
 0x22b   :  { %414 = vmatpush.msra.mxu2 %v678_v0  ;;  %v1057_v0 = vld [vmem:[%s1162_s6 + $0x10] sm:$0x1] }
 0x22d   :  { %415 = vmatpush.msra.mxu2 %v683_v1  ;;  %v410_v1 = vld.sshfl [vmem:[#allocation1] sm:$0xff pattern:$0x75316420] }
 0x22f   :  { %416 = vmatpush.msra.mxu2 %v694_v3  ;;  %v1070_v3 = vpop.permute.xlu2 %352 }
 0x231   :  { %417 = vmatpush.msra.mxu2 %v711_v7 }
 0x232   :  { %597 = vmatmul.msk.f32.gmra.mxu2 %vm365_vm3, %v1046_v63 }
 0x233   :  { %418 = vmatpush.msra.mxu2 %v723_v9 }
 0x235   :  { %419 = vmatpush.msra.mxu2 %v733_v11  ;;  %v1077_v11 = vpop.permute.xlu0 %357 }
 0x237   :  { %420 = vmatpush.msra.mxu2 %v746_v14 }
 0x239   :  { %421 = vmatpush.msra.mxu2 %v758_v17 }
 0x23a   :  { %598 = vmatmul.msk.f32.gmra.mxu2 %vm365_vm3, %v1057_v0 }
 0x23b   :  { %422 = vmatpush.msra.mxu2 %v767_v19  ;;  %v1084_v19 = vpop.permute.xlu1 %362 }
 0x23d   :  { %423 = vmatpush.msra.mxu2 %v779_v22 }
 0x23f   :  { %424 = vmatpush.msra.mxu2 %v788_v26 }
 0x241   :  { %425 = vmatpush.msra.mxu2 %v797_v28 }
 0x243   :  { %426 = vmatpush.msra.mxu2 %v806_v30 }
 0x245   :  { %427 = vmatpush.msra.mxu2 %v815_v32 }
 0x247   :  { %428 = vmatpush.msra.mxu2 %v824_v34 }
 0x249   :  { %429 = vmatpush.msra.mxu2 %v833_v36 }
 0x24a   :  { %430 = vmatmul.f32.vlgmr.msra.gmra.mxu2 %v410_v1 }
 0x282   :  { %v451_v28 = vpop.f32.mrf.mxu1 }
 0x2ad   :  { %v392_v7 = vpop.f32.mrf.mxu2 }
 0x2ae   :  { %v393_v9 = vadd.f32 %v392_v7, %v1070_v3 }
 0x2b0   :  { %402 = vst.msk [vmem:[%s1163_s8] sm:$0xff] %vm401_vm4, %v393_v9 }
 0x2b5   :  { %v395_v14 = vpop.f32.mrf.mxu2 }
 0x2b6   :  { %v396_v17 = vadd.f32 %v395_v14, %v1077_v11 }
 0x2b8   :  { %403 = vst.msk [vmem:[%s1163_s8 + $0x8] sm:$0xff] %vm401_vm4, %v396_v17 }
 0x2bd   :  { %v398_v22 = vpop.f32.mrf.mxu2 }
 0x2be   :  { %v399_v26 = vadd.f32 %v398_v22, %v1084_v19 }
 0x2c0   :  { %405 = vst.msk [vmem:[%s1163_s8 + $0x10] sm:$0x1] %vm404_vm5, %v399_v26 }
 0x2cd   :  { %v431_v30 = vpop.f32.mrf.mxu2 }
 0x2ce   :  { %v452_v32 = vadd.f32 %v451_v28, %v431_v30 }
 0x2d0   :  { %600 = vmatpush.msk.msrb.mxu2 %vm175_vm0, %v452_v32 }
 0x2d1   :  { %601 = vmatmul.msk.f32.vlgmr.msrb.gmra.mxu2 %vm162_vm1, %v874_v50 }
 0x2d9   :  { %602 = vmatmul.msk.f32.gmra.mxu2 %vm162_vm1, %v888_v53 }
 0x2e1   :  { %603 = vmatmul.msk.f32.gmra.mxu2 %vm162_vm1, %v895_v54 }
 0x2e9   :  { %604 = vmatmul.msk.f32.gmra.mxu2 %vm162_vm1, %v902_v55 }
 0x354   :  { %v474_v34 = vpop.f32.mrf.mxu2 }
 0x355   :  { %v475_v15 = vadd.f32 %v474_v34, %v915_v6 }
 0x357   :  { %v486_v54 = vmax.f32 %v475_v15, 0.0 }
 0x35c   :  { %v477_v36 = vpop.f32.mrf.mxu2 }
 0x35d   :  { %v478_v13 = vadd.f32 %v477_v36, %v908_v60 }
 0x35f   :  { %v487_v23 = vmax.f32 %v478_v13, 0.0 }
 0x364   :  { %v480_v4 = vpop.f32.mrf.mxu2 }
 0x365   :  { %v481_v10 = vadd.f32 %v480_v4, %v910_v61 }
 0x367   :  { %v488_v53 = vmax.f32 %v481_v10, 0.0 }
 0x36c   :  { %v483_v5 = vpop.f32.mrf.mxu2 }
 0x36d   :  { %v484_v12 = vadd.f32 %v483_v5, %v906_v58 }
 0x36f   :  { %v489_v50 = vmax.f32 %v484_v12, 0.0 }
 0x371   :  { %502 = vmatpush.msrb.mxu0 %v489_v50 }
 0x373   :  { %503 = vmatpush.msrb.mxu0 %v488_v53 }
 0x375   :  { %504 = vmatpush.msrb.mxu0 %v487_v23 }
 0x377   :  { %505 = vmatpush.msrb.mxu0 %v486_v54 }
 0x378   :  { %605 = vmatmul.msk.f32.vlgmr.msrb.gmra.mxu0 %vm262_vm2, %v924_v16 }
 0x380   :  { %606 = vmatmul.msk.f32.gmra.mxu0 %vm262_vm2, %v929_v18 }
 0x388   :  { %607 = vmatmul.msk.f32.gmra.mxu0 %vm262_vm2, %v941_v21 }
 0x390   :  { %608 = vmatmul.msk.f32.gmra.mxu0 %vm262_vm2, %v951_v24 }
 0x398   :  { %609 = vmatmul.msk.f32.gmra.mxu0 %vm262_vm2, %v961_v27 }
 0x3a0   :  { %610 = vmatmul.msk.f32.gmra.mxu0 %vm262_vm2, %v968_v29 }
 0x3a8   :  { %611 = vmatmul.msk.f32.gmra.mxu0 %vm262_vm2, %v978_v33 }
 0x3b0   :  { %612 = vmatmul.msk.f32.gmra.mxu0 %vm262_vm2, %v985_v35 }
 0x3b8   :  { %613 = vmatmul.msk.f32.gmra.mxu0 %vm262_vm2, %v992_v37 }
 0x3c0   :  { %614 = vmatmul.msk.f32.gmra.mxu0 %vm262_vm2, %v999_v38 }
 0x3f5   :  { %v507_v55 = vpop.f32.mrf.mxu0 }
 0x3fd   :  { %v510_v58 = vpop.f32.mrf.mxu0 }
 0x405   :  { %v513_v60 = vpop.f32.mrf.mxu0 }
 0x40d   :  { %v516_v61 = vpop.f32.mrf.mxu0 }
 0x40e   :  { %v517_v56 = vadd.f32 %v516_v61, %v1019_v8 }
 0x410   :  { %v540_v57 = vmax.f32 %v517_v56, 0.0 }
 0x415   :  { %v519_v6 = vpop.f32.mrf.mxu0 }
 0x416   :  { %v520_v48 = vadd.f32 %v519_v6, %v1016_v2 }
 0x41d   :  { %v522_v16 = vpop.f32.mrf.mxu0 }
 0x41e   :  { %v523_v31 = vadd.f32 %v522_v16, %v1011_v52  ;;  %v508_v52 = vadd.f32 %v507_v55, %v1030_v42 }
 0x420   :  { %v537_v2 = vmax.f32 %v508_v52, 0.0 }
 0x425   :  { %v525_v18 = vpop.f32.mrf.mxu0 }
 0x426   :  { %v526_v25 = vadd.f32 %v525_v18, %v1009_v51  ;;  %v511_v51 = vadd.f32 %v510_v58, %v1027_v46 }
 0x428   :  { %v543_v43 = vmax.f32 %v526_v25, 0.0  ;;  %v538_v41 = vmax.f32 %v511_v51, 0.0 }
 0x42d   :  { %v528_v21 = vpop.f32.mrf.mxu0 }
 0x42e   :  { %v529_v35 = vadd.f32 %v528_v21, %v1007_v49  ;;  %v541_v49 = vmax.f32 %v520_v48, 0.0 }
 0x430   :  { %v544_v44 = vmax.f32 %v529_v35, 0.0 }
 0x435   :  { %v531_v24 = vpop.f32.mrf.mxu0 }
 0x436   :  { %v532_v29 = vadd.f32 %v531_v24, %v1005_v47  ;;  %v542_v47 = vmax.f32 %v523_v31, 0.0 }
 0x438   :  { %v545_v38 = vmax.f32 %v532_v29, 0.0 }
 0x43d   :  { %v534_v27 = vpop.f32.mrf.mxu0 }
 0x43e   :  { %v535_v33 = vadd.f32 %v534_v27, %v1003_v45  ;;  %v514_v45 = vadd.f32 %v513_v60, %v1023_v20 }
 0x440   :  { %v546_v37 = vmax.f32 %v535_v33, 0.0  ;;  %v539_v59 = vmax.f32 %v514_v45, 0.0 }
 0x442   :  { %553 = vmatpush.msra.mxu1 %v546_v37 }
 0x444   :  { %554 = vmatpush.msra.mxu1 %v545_v38 }
 0x446   :  { %555 = vmatpush.msra.mxu1 %v544_v44 }
 0x448   :  { %556 = vmatpush.msra.mxu1 %v543_v43 }
 0x44a   :  { %557 = vmatpush.msra.mxu1 %v542_v47 }
 0x44c   :  { %558 = vmatpush.msra.mxu1 %v541_v49 }
 0x44e   :  { %559 = vmatpush.msra.mxu1 %v540_v57 }
 0x450   :  { %560 = vmatpush.msra.mxu1 %v539_v59 }
 0x452   :  { %561 = vmatpush.msra.mxu1 %v538_v41 }
 0x454   :  { %562 = vmatpush.msra.mxu1 %v537_v2 }
 0x455   :  { %615 = vmatmul.msk.f32.vlgmr.msra.gmra.mxu1 %vm365_vm3, %v1036_v40 }
 0x45d   :  { %616 = vmatmul.msk.f32.gmra.mxu1 %vm365_vm3, %v1046_v63 }
 0x465   :  { %617 = vmatmul.msk.f32.gmra.mxu1 %vm365_vm3, %v1057_v0 }
 0x4d2   :  { %v564_v8 = vpop.f32.mrf.mxu1 }
 0x4d3   :  { %v565_v20 = vadd.f32 %v564_v8, %v1070_v3 }
 0x4d5   :  { %618 = vst.msk [vmem:[%s1163_s8 + $0x18] sm:$0xff] %vm401_vm4, %v565_v20 }
 0x4da   :  { %v567_v46 = vpop.f32.mrf.mxu1 }
 0x4db   :  { %v568_v42 = vadd.f32 %v567_v46, %v1077_v11 }
 0x4dd   :  { %619 = vst.msk [vmem:[%s1163_s8 + $0x20] sm:$0xff] %vm401_vm4, %v568_v42 }
 0x4e2   :  { %v570_v62 = vpop.f32.mrf.mxu1 }
 0x4e3   :  { %v571_v40 = vadd.f32 %v570_v62, %v1084_v19 }
 0x4e5   :  { %620 = vst.msk [vmem:[%s1163_s8 + $0x28] sm:$0x1] %vm404_vm5, %v571_v40 }

</bundles_post_ra>
